<compile_context>
chip_gen: v6e
topology: v6e:2x2x1
jax: 0.10.0
libtpu: 0.0.40
codegen_flags: <defaults>
</compile_context>

<pallas_src>
import jax
import jax.numpy as jnp
import numpy as np
from jax.experimental import pallas as pl
from jax.experimental.pallas import tpu as pltpu


def _round_up(x: int, m: int) -> int:
    return ((x + m - 1) // m) * m


def _make_mlp_kernel(num_layers: int):
    def kernel(x_ref, *refs):
        # refs = (w0, b0, w1, b1, ..., w{L-1}, b{L-1}, out)
        o_ref = refs[-1]
        wb = refs[:-1]
        h = x_ref[...]                                   # [in, batch_tile], f32
        for l in range(num_layers):
            w = wb[2 * l][...]                           # [out_l, in_l] (PyTorch layout)
            b = wb[2 * l + 1][...]                       # [out_l, 1]
            h = jnp.dot(w, h, preferred_element_type=jnp.float32) + b
            if l != num_layers - 1:
                h = jnp.maximum(h, 0.0)                  # ReLU on hidden layers only
        o_ref[...] = h.astype(o_ref.dtype)               # lane-dense store

    return kernel


def deeptimedelay_forward(x, weights, biases, *, batch_tile=512):
    """Forward pass of DeeptimedelayNN.

    x:          [B, input_size]
    weights[l]: [out_l, in_l]   (PyTorch nn.Linear layout, NOT pre-transposed)
    biases[l]:  [out_l]
    returns     [B, input_size]
    """
    B, n_in = x.shape
    num_layers = len(weights)
    n_out = int(weights[-1].shape[0])
    assert batch_tile % 128 == 0, "batch_tile must be a multiple of 128 (lane axis)"

    # Effective lane tile: multiple of 128, no larger than needed.
    b_128 = _round_up(B, 128)
    tile = min(batch_tile, b_128)
    B_pad = _round_up(B, tile)

    # Batch on the lane axis; pad with zeros (sliced away at the end).
    xt = x.T                                             # [n_in, B]
    if B_pad != B:
        xt = jnp.pad(xt, ((0, 0), (0, B_pad - B)))

    grid = (B_pad // tile,)

    in_specs = [pl.BlockSpec((n_in, tile), lambda i: (0, i))]
    flat_params = []
    for w, b in zip(weights, biases):
        b2 = b.reshape(b.shape[-1], 1)                   # [out_l, 1]: broadcasts over lanes
        in_specs.append(pl.BlockSpec(tuple(int(d) for d in w.shape), lambda i: (0, 0)))
        in_specs.append(pl.BlockSpec(tuple(int(d) for d in b2.shape), lambda i: (0, 0)))
        flat_params.extend([w, b2])

    out_spec = pl.BlockSpec((n_out, tile), lambda i: (0, i))

    # Advisory cost estimate for XLA's scheduler.
    flops = int(2 * B_pad * sum(int(w.shape[0]) * int(w.shape[1]) for w in weights))
    bytes_accessed = int(
        B_pad * n_in * x.dtype.itemsize
        + B_pad * n_out * x.dtype.itemsize
        + sum(int(np.prod(w.shape)) * w.dtype.itemsize for w in weights)
        + sum(int(np.prod(b.shape)) * b.dtype.itemsize for b in biases)
    )

    out_t = pl.pallas_call(
        _make_mlp_kernel(num_layers),
        out_shape=jax.ShapeDtypeStruct((n_out, B_pad), x.dtype),
        grid_spec=pltpu.PrefetchScalarGridSpec(
            num_scalar_prefetch=0,
            grid=grid,
            in_specs=in_specs,
            out_specs=out_spec,
        ),
        compiler_params=pltpu.CompilerParams(
            dimension_semantics=("parallel",),
        ),
        cost_estimate=pl.CostEstimate(
            flops=flops, transcendentals=0, bytes_accessed=bytes_accessed),
    )(xt, *flat_params)

    return out_t[:, :B].T                                # back to [B, n_out]


def init_params(key, input_size, hidden_size, layers_size):
    """Deterministic params matching DeeptimedelayNN.__init__ (PyTorch [out, in] layout)."""
    dims = [input_size] + [hidden_size] * (layers_size - 1) + [input_size]
    weights, biases = [], []
    for l in range(layers_size):
        key, kw, kb = jax.random.split(key, 3)
        fan_in = dims[l]
        bound = 1.0 / np.sqrt(fan_in)
        w = jax.random.uniform(kw, (dims[l + 1], dims[l]), jnp.float32, -bound, bound)
        b = jax.random.uniform(kb, (dims[l + 1],), jnp.float32, -bound, bound)
        weights.append(w)
        biases.append(b)
    return weights, biases


def reference_forward(x, weights, biases):
    h = x
    num_layers = len(weights)
    for l, (w, b) in enumerate(zip(weights, biases)):
        h = h @ w.T + b
        if l != num_layers - 1:
            h = jnp.maximum(h, 0.0)
    return h


if __name__ == "__main__":
    input_size = 16
    hidden_size = 32
    layers_size = 5

    key = jax.random.PRNGKey(0)
    key, kx1, kx2 = jax.random.split(key, 3)
    weights, biases = init_params(key, input_size, hidden_size, layers_size)

    # Small batch (exercises padding 16 -> one 128-lane tile).
    x1 = jax.random.normal(kx1, (16, input_size), jnp.float32)
    out1 = jax.block_until_ready(deeptimedelay_forward(x1, weights, biases))
    ref1 = reference_forward(x1, weights, biases)
    np.testing.assert_allclose(np.asarray(out1), np.asarray(ref1), rtol=1e-5, atol=1e-5)

    # Non-multiple batch with a multi-step parallel grid (300 -> pad 384, 3 tiles of 128).
    x2 = jax.random.normal(kx2, (300, input_size), jnp.float32)
    out2 = jax.block_until_ready(
        deeptimedelay_forward(x2, weights, biases, batch_tile=128))
    ref2 = reference_forward(x2, weights, biases)
    np.testing.assert_allclose(np.asarray(out2), np.asarray(ref2), rtol=1e-5, atol=1e-5)

    print("KERNEL_OK")
</pallas_src>

<mosaic_0001>
module attributes {stable_mosaic.version = 11 : i64} {
  func.func @kernel(%arg0: i32, %arg1: memref<16x128xf32, #tpu.memory_space<vmem>>, %arg2: memref<32x16xf32, #tpu.memory_space<vmem>>, %arg3: memref<32x1xf32, #tpu.memory_space<vmem>>, %arg4: memref<32x32xf32, #tpu.memory_space<vmem>>, %arg5: memref<32x1xf32, #tpu.memory_space<vmem>>, %arg6: memref<32x32xf32, #tpu.memory_space<vmem>>, %arg7: memref<32x1xf32, #tpu.memory_space<vmem>>, %arg8: memref<32x32xf32, #tpu.memory_space<vmem>>, %arg9: memref<32x1xf32, #tpu.memory_space<vmem>>, %arg10: memref<16x32xf32, #tpu.memory_space<vmem>>, %arg11: memref<16x1xf32, #tpu.memory_space<vmem>>, %arg12: memref<16x128xf32, #tpu.memory_space<vmem>>) attributes {dimension_semantics = [#tpu.dimension_semantics<parallel>], iteration_bounds = array<i64: 1>, scalar_prefetch = 0 : i64, scratch_operands = 0 : i64, tpu.core_type = #tpu.core_type<tc>, window_params = [{transform_indices = @transform_0, window_bounds = array<i64: 16, 128>}, {pipeline_mode = #tpu.pipeline_mode<synchronous>, transform_indices = @transform_1, window_bounds = array<i64: 32, 16>}, {pipeline_mode = #tpu.pipeline_mode<synchronous>, transform_indices = @transform_2, window_bounds = array<i64: 32, 1>}, {pipeline_mode = #tpu.pipeline_mode<synchronous>, transform_indices = @transform_3, window_bounds = array<i64: 32, 32>}, {pipeline_mode = #tpu.pipeline_mode<synchronous>, transform_indices = @transform_4, window_bounds = array<i64: 32, 1>}, {pipeline_mode = #tpu.pipeline_mode<synchronous>, transform_indices = @transform_5, window_bounds = array<i64: 32, 32>}, {pipeline_mode = #tpu.pipeline_mode<synchronous>, transform_indices = @transform_6, window_bounds = array<i64: 32, 1>}, {pipeline_mode = #tpu.pipeline_mode<synchronous>, transform_indices = @transform_7, window_bounds = array<i64: 32, 32>}, {pipeline_mode = #tpu.pipeline_mode<synchronous>, transform_indices = @transform_8, window_bounds = array<i64: 32, 1>}, {pipeline_mode = #tpu.pipeline_mode<synchronous>, transform_indices = @transform_9, window_bounds = array<i64: 16, 32>}, {pipeline_mode = #tpu.pipeline_mode<synchronous>, transform_indices = @transform_10, window_bounds = array<i64: 16, 1>}, {transform_indices = @transform_11, window_bounds = array<i64: 16, 128>}]} {
    %c0 = arith.constant 0 : index
    %c0_0 = arith.constant 0 : index
    %0 = vector.load %arg1[%c0, %c0_0] : memref<16x128xf32, #tpu.memory_space<vmem>>, vector<16x128xf32>
    %c0_1 = arith.constant 0 : index
    %c0_2 = arith.constant 0 : index
    %1 = vector.load %arg2[%c0_1, %c0_2] : memref<32x16xf32, #tpu.memory_space<vmem>>, vector<32x16xf32>
    %c0_3 = arith.constant 0 : index
    %c0_4 = arith.constant 0 : index
    %2 = vector.load %arg3[%c0_3, %c0_4] : memref<32x1xf32, #tpu.memory_space<vmem>>, vector<32x1xf32>
    %cst = arith.constant dense<0.000000e+00> : vector<32x128xf32>
    %3 = tpu.matmul %1, %0, %cst {dimension_numbers = #tpu.dot_dimension_numbers<[1], [0], [0], [1], [0, 0, 1, 1], [], []>} : vector<32x16xf32>, vector<16x128xf32>, vector<32x128xf32> -> vector<32x128xf32>
    %4 = vector.broadcast %2 : vector<32x1xf32> to vector<32x128xf32>
    %5 = arith.addf %3, %4 : vector<32x128xf32>
    %cst_5 = arith.constant 0.000000e+00 : f32
    %6 = vector.broadcast %cst_5 : f32 to vector<32x128xf32>
    %7 = arith.maximumf %5, %6 : vector<32x128xf32>
    %c0_6 = arith.constant 0 : index
    %c0_7 = arith.constant 0 : index
    %8 = vector.load %arg4[%c0_6, %c0_7] : memref<32x32xf32, #tpu.memory_space<vmem>>, vector<32x32xf32>
    %c0_8 = arith.constant 0 : index
    %c0_9 = arith.constant 0 : index
    %9 = vector.load %arg5[%c0_8, %c0_9] : memref<32x1xf32, #tpu.memory_space<vmem>>, vector<32x1xf32>
    %cst_10 = arith.constant dense<0.000000e+00> : vector<32x128xf32>
    %10 = tpu.matmul %8, %7, %cst_10 {dimension_numbers = #tpu.dot_dimension_numbers<[1], [0], [0], [1], [0, 0, 1, 1], [], []>} : vector<32x32xf32>, vector<32x128xf32>, vector<32x128xf32> -> vector<32x128xf32>
    %11 = vector.broadcast %9 : vector<32x1xf32> to vector<32x128xf32>
    %12 = arith.addf %10, %11 : vector<32x128xf32>
    %cst_11 = arith.constant 0.000000e+00 : f32
    %13 = vector.broadcast %cst_11 : f32 to vector<32x128xf32>
    %14 = arith.maximumf %12, %13 : vector<32x128xf32>
    %c0_12 = arith.constant 0 : index
    %c0_13 = arith.constant 0 : index
    %15 = vector.load %arg6[%c0_12, %c0_13] : memref<32x32xf32, #tpu.memory_space<vmem>>, vector<32x32xf32>
    %c0_14 = arith.constant 0 : index
    %c0_15 = arith.constant 0 : index
    %16 = vector.load %arg7[%c0_14, %c0_15] : memref<32x1xf32, #tpu.memory_space<vmem>>, vector<32x1xf32>
    %cst_16 = arith.constant dense<0.000000e+00> : vector<32x128xf32>
    %17 = tpu.matmul %15, %14, %cst_16 {dimension_numbers = #tpu.dot_dimension_numbers<[1], [0], [0], [1], [0, 0, 1, 1], [], []>} : vector<32x32xf32>, vector<32x128xf32>, vector<32x128xf32> -> vector<32x128xf32>
    %18 = vector.broadcast %16 : vector<32x1xf32> to vector<32x128xf32>
    %19 = arith.addf %17, %18 : vector<32x128xf32>
    %cst_17 = arith.constant 0.000000e+00 : f32
    %20 = vector.broadcast %cst_17 : f32 to vector<32x128xf32>
    %21 = arith.maximumf %19, %20 : vector<32x128xf32>
    %c0_18 = arith.constant 0 : index
    %c0_19 = arith.constant 0 : index
    %22 = vector.load %arg8[%c0_18, %c0_19] : memref<32x32xf32, #tpu.memory_space<vmem>>, vector<32x32xf32>
    %c0_20 = arith.constant 0 : index
    %c0_21 = arith.constant 0 : index
    %23 = vector.load %arg9[%c0_20, %c0_21] : memref<32x1xf32, #tpu.memory_space<vmem>>, vector<32x1xf32>
    %cst_22 = arith.constant dense<0.000000e+00> : vector<32x128xf32>
    %24 = tpu.matmul %22, %21, %cst_22 {dimension_numbers = #tpu.dot_dimension_numbers<[1], [0], [0], [1], [0, 0, 1, 1], [], []>} : vector<32x32xf32>, vector<32x128xf32>, vector<32x128xf32> -> vector<32x128xf32>
    %25 = vector.broadcast %23 : vector<32x1xf32> to vector<32x128xf32>
    %26 = arith.addf %24, %25 : vector<32x128xf32>
    %cst_23 = arith.constant 0.000000e+00 : f32
    %27 = vector.broadcast %cst_23 : f32 to vector<32x128xf32>
    %28 = arith.maximumf %26, %27 : vector<32x128xf32>
    %c0_24 = arith.constant 0 : index
    %c0_25 = arith.constant 0 : index
    %29 = vector.load %arg10[%c0_24, %c0_25] : memref<16x32xf32, #tpu.memory_space<vmem>>, vector<16x32xf32>
    %c0_26 = arith.constant 0 : index
    %c0_27 = arith.constant 0 : index
    %30 = vector.load %arg11[%c0_26, %c0_27] : memref<16x1xf32, #tpu.memory_space<vmem>>, vector<16x1xf32>
    %cst_28 = arith.constant dense<0.000000e+00> : vector<16x128xf32>
    %31 = tpu.matmul %29, %28, %cst_28 {dimension_numbers = #tpu.dot_dimension_numbers<[1], [0], [0], [1], [0, 0, 1, 1], [], []>} : vector<16x32xf32>, vector<32x128xf32>, vector<16x128xf32> -> vector<16x128xf32>
    %32 = vector.broadcast %30 : vector<16x1xf32> to vector<16x128xf32>
    %33 = arith.addf %31, %32 : vector<16x128xf32>
    %c0_29 = arith.constant 0 : index
    %c0_30 = arith.constant 0 : index
    %34 = vector.load %arg12[%c0_29, %c0_30] : memref<16x128xf32, #tpu.memory_space<vmem>>, vector<16x128xf32>
    tpu.vector_store %arg12[%c0_29, %c0_30], %33 {strides = array<i32>} : memref<16x128xf32, #tpu.memory_space<vmem>>, vector<16x128xf32>,
    return
  }
  func.func @transform_0(%arg0: i32) -> (i32, i32) {
    %c0_i32 = arith.constant 0 : i32
    %c0_i32_0 = arith.constant 0 : i32
    return %c0_i32, %arg0 : i32, i32
  }
  func.func @transform_1(%arg0: i32) -> (i32, i32) {
    %c0_i32 = arith.constant 0 : i32
    %c0_i32_0 = arith.constant 0 : i32
    %c0_i32_1 = arith.constant 0 : i32
    return %c0_i32, %c0_i32_0 : i32, i32
  }
  func.func @transform_2(%arg0: i32) -> (i32, i32) {
    %c0_i32 = arith.constant 0 : i32
    %c0_i32_0 = arith.constant 0 : i32
    %c0_i32_1 = arith.constant 0 : i32
    return %c0_i32, %c0_i32_0 : i32, i32
  }
  func.func @transform_3(%arg0: i32) -> (i32, i32) {
    %c0_i32 = arith.constant 0 : i32
    %c0_i32_0 = arith.constant 0 : i32
    %c0_i32_1 = arith.constant 0 : i32
    return %c0_i32, %c0_i32_0 : i32, i32
  }
  func.func @transform_4(%arg0: i32) -> (i32, i32) {
    %c0_i32 = arith.constant 0 : i32
    %c0_i32_0 = arith.constant 0 : i32
    %c0_i32_1 = arith.constant 0 : i32
    return %c0_i32, %c0_i32_0 : i32, i32
  }
  func.func @transform_5(%arg0: i32) -> (i32, i32) {
    %c0_i32 = arith.constant 0 : i32
    %c0_i32_0 = arith.constant 0 : i32
    %c0_i32_1 = arith.constant 0 : i32
    return %c0_i32, %c0_i32_0 : i32, i32
  }
  func.func @transform_6(%arg0: i32) -> (i32, i32) {
    %c0_i32 = arith.constant 0 : i32
    %c0_i32_0 = arith.constant 0 : i32
    %c0_i32_1 = arith.constant 0 : i32
    return %c0_i32, %c0_i32_0 : i32, i32
  }
  func.func @transform_7(%arg0: i32) -> (i32, i32) {
    %c0_i32 = arith.constant 0 : i32
    %c0_i32_0 = arith.constant 0 : i32
    %c0_i32_1 = arith.constant 0 : i32
    return %c0_i32, %c0_i32_0 : i32, i32
  }
  func.func @transform_8(%arg0: i32) -> (i32, i32) {
    %c0_i32 = arith.constant 0 : i32
    %c0_i32_0 = arith.constant 0 : i32
    %c0_i32_1 = arith.constant 0 : i32
    return %c0_i32, %c0_i32_0 : i32, i32
  }
  func.func @transform_9(%arg0: i32) -> (i32, i32) {
    %c0_i32 = arith.constant 0 : i32
    %c0_i32_0 = arith.constant 0 : i32
    %c0_i32_1 = arith.constant 0 : i32
    return %c0_i32, %c0_i32_0 : i32, i32
  }
  func.func @transform_10(%arg0: i32) -> (i32, i32) {
    %c0_i32 = arith.constant 0 : i32
    %c0_i32_0 = arith.constant 0 : i32
    %c0_i32_1 = arith.constant 0 : i32
    return %c0_i32, %c0_i32_0 : i32, i32
  }
  func.func @transform_11(%arg0: i32) -> (i32, i32) {
    %c0_i32 = arith.constant 0 : i32
    %c0_i32_0 = arith.constant 0 : i32
    return %c0_i32, %arg0 : i32, i32
  }
}

</mosaic_0001>

<bundles_post_ra>
// kernel: tpu_custom_call.1
= control target key start
LH: loop header
LB: loop body
LE: loop exit
PB: predicated region body
PF: predicated region fallthrough
CT: control target
= control target key end

     0   :  { %vm69_vm0 = vcmask 130048   ;;  %v817_v4 = vmov 0   ;;  %s1016_s0 = inlined_call_operand.vmem [shape: f32[16,128], index: 0, kind: input, shape index: {}]   ;;  %s1017_s1 = inlined_call_operand.vmem [shape: f32[32,16], index: 1, kind: input, shape index: {}]   ;;  %s1018_s2 = inlined_call_operand.vmem [shape: f32[32,1], index: 2, kind: input, shape index: {}]   ;;  %s1019_s3 = inlined_call_operand.vmem [shape: f32[32,32], index: 3, kind: input, shape index: {}]   ;;  %s1020_s4 = inlined_call_operand.vmem [shape: f32[32,1], index: 4, kind: input, shape index: {}]   ;;  %s1021_s5 = inlined_call_operand.vmem [shape: f32[32,32], index: 5, kind: input, shape index: {}]   ;;  %s1022_s6 = inlined_call_operand.vmem [shape: f32[32,1], index: 6, kind: input, shape index: {}]   ;;  %s1023_s7 = inlined_call_operand.vmem [shape: f32[32,32], index: 7, kind: input, shape index: {}]   ;;  %s1024_s8 = inlined_call_operand.vmem [shape: f32[32,1], index: 8, kind: input, shape index: {}]   ;;  %s1025_s9 = inlined_call_operand.vmem [shape: f32[16,32], index: 9, kind: input, shape index: {}]   ;;  %s1026_s10 = inlined_call_operand.vmem [shape: f32[16,1], index: 10, kind: input, shape index: {}]   ;;  %s1027_s11 = inlined_call_operand.hbm [shape: f32[16,128], index: 11, kind: output, shape index: {}]  }
   0x1   :  { %v40_v0 = vld [vmem:[%s1016_s0 + $0x8] sm:$0xff]  ;;  %v39_v1 = vld [vmem:[%s1016_s0] sm:$0xff]  ;;  %793 = vset.pattern.permute.xlu0 %v817_v4  ;;  %v48_v5 = vld [vmem:[%s1018_s2 + $0x18] sm:$0xff]  ;;  %794 = vset.pattern.permute.xlu1 %v817_v4 }
   0x2   :  { %v41_v2 = vld [vmem:[%s1017_s1] sm:$0xff]  ;;  %726 = vmatprep.subr.mxu0 %v40_v0  ;;  %v42_v3 = vld [vmem:[%s1017_s1 + $0x8] sm:$0xff]  ;;  %v43_v7 = vld [vmem:[%s1017_s1 + $0x10] sm:$0xff]  ;;  %66 = vperm.xlu0 %793, %v48_v5  }
   0x3   :  { %730 = vmatprep.mubr.msk.f32.mxu0 %vm69_vm0, %v41_v2  ;;  %727 = vmatpush3.msra.mxu0 %v40_v0  ;;  %v46_v6 = vld [vmem:[%s1018_s2 + $0x8] sm:$0xff]  ;;  %v47_v8 = vld [vmem:[%s1018_s2 + $0x10] sm:$0xff]  ;;  %v44_v9 = vld [vmem:[%s1017_s1 + $0x18] sm:$0xff] }
   0x4   :  { %728 = vmatprep.subr.mxu0 %v39_v1  ;;  %56 = vperm.xlu1 %794, %v46_v6   ;;  %v45_v10 = vld [vmem:[%s1018_s2] sm:$0xff]  ;;  %v178_v11 = vld [vmem:[%s1020_s4 + $0x18] sm:$0xff] }
   0x5   :  { %729 = vmatpush3.msra.mxu0 %v39_v1 }
   0x6   :  { %731 = vmatmul.mubr.msk.f32.vlgmr.msra.gmra.mxu0 %vm69_vm0, %v42_v3  ;;  %61 = vperm.xlu0 %793, %v47_v8  }
   0x7   :  { %733 = vmatprep.mubr.msk.f32.mxu0 %vm69_vm0, %v43_v7 }
   0x8   :  { %16 = vsyncpa [#allocation3], 0  ;;  %51 = vperm.xlu1 %794, %v45_v10   ;;  %v177_v12 = vld [vmem:[%s1020_s4 + $0x10] sm:$0xff]  ;;  %v176_v13 = vld [vmem:[%s1020_s4 + $0x8] sm:$0xff]  ;;  %vm199_vm1 = vcmask 261120   ;;  %s818_s20 = smov [#allocation2]  }
   0x9   :  { %v175_v14 = vld [vmem:[%s1020_s4] sm:$0xff]  ;;  %v308_v15 = vld [vmem:[%s1022_s6 + $0x18] sm:$0xff]  ;;  %v307_v16 = vld [vmem:[%s1022_s6 + $0x10] sm:$0xff]  ;;  %s661_s21 = sshll.u32 %s818_s20, 4  ;;  %s662_s21 = int_to_ptr.vmem [resolvable:$true] %s661_s21 }
   0xa   :  { %734 = vmatmul.mubr.msk.f32.gmra.mxu0 %vm69_vm0, %v44_v9  ;;  %196 = vperm.xlu0 %793, %v178_v11   ;;  %v306_v17 = vld [vmem:[%s1022_s6 + $0x8] sm:$0xff]  ;;  %v305_v18 = vld [vmem:[%s1022_s6] sm:$0xff]  ;;  %v437_v19 = vld [vmem:[%s1024_s8 + $0x18] sm:$0xff]  ;;  %s795_s1 = scalar_lea.vmem %s662_s21, 256  ;;  %p800_p1 = scmp.lt.s32.totalorder %s662_s21, %s662_s21 }
   0xb   :  { %v436_v20 = vld [vmem:[%s1024_s8 + $0x10] sm:$0xff]  ;;  %v435_v21 = vld [vmem:[%s1024_s8 + $0x8] sm:$0xff]  ;;  %v434_v22 = vld [vmem:[%s1024_s8] sm:$0xff]  ;;  %p796_p0 = scmp.ne.s32.totalorder %s662_s21, %s795_s1  ;;  %p801_p2 = scmp.lt.s32.totalorder %s795_s1, %s795_s1 }
   0xc   :  { %191 = vperm.xlu1 %794, %v177_v12   ;;  %v561_v23 = vld [vmem:[%s1026_s10] sm:$0xff]  ;;  %v562_v24 = vld [vmem:[%s1026_s10 + $0x8] sm:$0xff]  ;;  %v173_v43 = vld [vmem:[%s1019_s3 + $0x10] sm:$0xff] }
   0xd   :  { %v171_v25 = vld [vmem:[%s1019_s3] sm:$0xff]  ;;  %v172_v42 = vld [vmem:[%s1019_s3 + $0x8] sm:$0xff]  ;;  %v174_v44 = vld [vmem:[%s1019_s3 + $0x18] sm:$0xff]  ;;  %p802_p3 = por %p801_p2, %p800_p1 }
   0xe   :  { %186 = vperm.xlu0 %793, %v176_v13   ;;  %744 = vmatprep.mubr.msk.f32.mxu1 %vm199_vm1, %v171_v25  ;;  %v301_v45 = vld [vmem:[%s1021_s5] sm:$0xff]  ;;  %v302_v62 = vld [vmem:[%s1021_s5 + $0x8] sm:$0xff]  ;;  %v303_v63 = vld [vmem:[%s1021_s5 + $0x10] sm:$0xff] }
   0xf   :  { %758 = vmatprep.mubr.msk.f32.mxu0 %vm199_vm1, %v301_v45  ;;  %v304_v0 = vld [vmem:[%s1021_s5 + $0x18] sm:$0xff]  ;;  %v430_v1 = vld [vmem:[%s1023_s7] sm:$0xff]  ;;  %p803_p4 = pnand %p802_p3, %p796_p0 }
  0x10   :  { %181 = vperm.xlu1 %794, %v175_v14  }
  0x12   :  { %326 = vperm.xlu0 %793, %v308_v15  }
  0x14   :  { %321 = vperm.xlu1 %794, %v307_v16  }
  0x16   :  { %316 = vperm.xlu0 %793, %v306_v17  }
  0x18   :  { %311 = vperm.xlu1 %794, %v305_v18   ;;  %v431_v18 = vld [vmem:[%s1023_s7 + $0x8] sm:$0xff] }
  0x1a   :  { %455 = vperm.xlu0 %793, %v437_v19   ;;  %v432_v19 = vld [vmem:[%s1023_s7 + $0x10] sm:$0xff] }
  0x1c   :  { %450 = vperm.xlu1 %794, %v436_v20   ;;  %v433_v20 = vld [vmem:[%s1023_s7 + $0x18] sm:$0xff] }
  0x1e   :  { %445 = vperm.xlu0 %793, %v435_v21   ;;  %v559_v21 = vld [vmem:[%s1025_s9] sm:$0xff] }
  0x20   :  { %440 = vperm.xlu1 %794, %v434_v22  }
  0x22   :  { %565 = vperm.xlu0 %793, %v561_v23  }
  0x24   :  { %570 = vperm.xlu1 %794, %v562_v24  }
  0x7d   :  { %v67_v26 = vpop.permute.xlu0 %66 }
  0x7f   :  { %v57_v28 = vpop.permute.xlu1 %56 }
  0x81   :  { %v62_v32 = vpop.permute.xlu0 %61 }
  0x83   :  { %v52_v37 = vpop.permute.xlu1 %51 }
  0x85   :  { %v197_v46 = vpop.permute.xlu0 %196 }
  0x87   :  { %v192_v48 = vpop.permute.xlu1 %191 }
  0x89   :  { %v187_v52 = vpop.permute.xlu0 %186 }
  0x8b   :  { %v182_v57 = vpop.permute.xlu1 %181 }
  0x8d   :  { %v327_v2 = vpop.permute.xlu0 %326 }
  0x8f   :  { %v322_v4 = vpop.permute.xlu1 %321 }
  0x91   :  { %v317_v8 = vpop.permute.xlu0 %316 }
  0x93   :  { %v312_v13 = vpop.permute.xlu1 %311 }
  0x95   :  { %v456_v22 = vpop.permute.xlu0 %455 }
  0x97   :  { %v451_v24 = vpop.permute.xlu1 %450 }
  0xc6   :  { %v732_v27 = vpop.f32.mrf.mxu0 }
  0xc7   :  { %v154_v34 = vadd.f32 %v732_v27, %v57_v28  ;;  %v446_v28 = vpop.permute.xlu0 %445 }
  0xc8   :  { %v148_v29 = vpop.f32.mrf.mxu0 }
  0xc9   :  { %v149_v38 = vadd.f32 %v148_v29, %v52_v37  ;;  %v168_v40 = vmax.f32 %v154_v34, 0.0 }
  0xca   :  { %v735_v30 = vpop.f32.mrf.mxu0 }
  0xcb   :  { %v164_v31 = vadd.f32 %v735_v30, %v67_v26  ;;  %v167_v41 = vmax.f32 %v149_v38, 0.0  ;;  %v560_v38 = vld [vmem:[%s1025_s9 + $0x8] sm:$0xff] }
  0xcc   :  { %v158_v33 = vpop.f32.mrf.mxu0 }
  0xcd   :  { %v170_v35 = vmax.f32 %v164_v31, 0.0  ;;  %v159_v36 = vadd.f32 %v158_v33, %v62_v32  ;;  %v441_v33 = vpop.permute.xlu1 %440 }
  0xcf   :  { %v169_v39 = vmax.f32 %v159_v36, 0.0  ;;  %736 = vmatprep.subr.mxu1 %v170_v35 }
  0xd0   :  { %737 = vmatpush3.msra.mxu1 %v170_v35 }
  0xd1   :  { %738 = vmatprep.subr.mxu1 %v169_v39 }
  0xd2   :  { %739 = vmatpush3.msra.mxu1 %v169_v39  ;;  %v571_v39 = vpop.permute.xlu1 %570 }
  0xd3   :  { %740 = vmatprep.subr.mxu1 %v168_v40 }
  0xd4   :  { %741 = vmatpush3.msra.mxu1 %v168_v40 }
  0xd5   :  { %742 = vmatprep.subr.mxu1 %v167_v41 }
  0xd6   :  { %743 = vmatpush3.msra.mxu1 %v167_v41 }
  0xd7   :  { %745 = vmatmul.mubr.msk.f32.vlgmr.msra.gmra.mxu1 %vm199_vm1, %v172_v42  ;;  %v566_v42 = vpop.permute.xlu0 %565 }
  0xd8   :  { %747 = vmatprep.mubr.msk.f32.mxu1 %vm199_vm1, %v173_v43 }
  0xdb   :  { %748 = vmatmul.mubr.msk.f32.gmra.mxu1 %vm199_vm1, %v174_v44 }
  0xdc   :  { %772 = vmatprep.mubr.msk.f32.mxu1 %vm199_vm1, %v430_v1 }
 0x197   :  { %v746_v47 = vpop.f32.mrf.mxu1 }
 0x198   :  { %v284_v54 = vadd.f32 %v746_v47, %v187_v52 }
 0x199   :  { %v278_v49 = vpop.f32.mrf.mxu1 }
 0x19a   :  { %v279_v58 = vadd.f32 %v278_v49, %v182_v57  ;;  %v298_v60 = vmax.f32 %v284_v54, 0.0 }
 0x19b   :  { %v749_v50 = vpop.f32.mrf.mxu1 }
 0x19c   :  { %v294_v51 = vadd.f32 %v749_v50, %v197_v46  ;;  %v297_v61 = vmax.f32 %v279_v58, 0.0 }
 0x19d   :  { %v288_v53 = vpop.f32.mrf.mxu1 }
 0x19e   :  { %v300_v55 = vmax.f32 %v294_v51, 0.0  ;;  %v289_v56 = vadd.f32 %v288_v53, %v192_v48 }
 0x1a0   :  { %v299_v59 = vmax.f32 %v289_v56, 0.0  ;;  %750 = vmatprep.subr.mxu0 %v300_v55 }
 0x1a1   :  { %751 = vmatpush3.msra.mxu0 %v300_v55 }
 0x1a2   :  { %752 = vmatprep.subr.mxu0 %v299_v59 }
 0x1a3   :  { %753 = vmatpush3.msra.mxu0 %v299_v59 }
 0x1a4   :  { %754 = vmatprep.subr.mxu0 %v298_v60 }
 0x1a5   :  { %755 = vmatpush3.msra.mxu0 %v298_v60 }
 0x1a6   :  { %756 = vmatprep.subr.mxu0 %v297_v61 }
 0x1a7   :  { %757 = vmatpush3.msra.mxu0 %v297_v61 }
 0x1a8   :  { %759 = vmatmul.mubr.msk.f32.vlgmr.msra.gmra.mxu0 %vm199_vm1, %v302_v62 }
 0x1a9   :  { %761 = vmatprep.mubr.msk.f32.mxu0 %vm199_vm1, %v303_v63 }
 0x1ac   :  { %762 = vmatmul.mubr.msk.f32.gmra.mxu0 %vm199_vm1, %v304_v0 }
 0x1ad   :  { %786 = vmatprep.mubr.msk.f32.mxu0 %vm199_vm1, %v559_v21 }
 0x268   :  { %v760_v3 = vpop.f32.mrf.mxu0 }
 0x269   :  { %v413_v10 = vadd.f32 %v760_v3, %v317_v8 }
 0x26a   :  { %v407_v5 = vpop.f32.mrf.mxu0 }
 0x26b   :  { %v408_v14 = vadd.f32 %v407_v5, %v312_v13  ;;  %v427_v16 = vmax.f32 %v413_v10, 0.0 }
 0x26c   :  { %v763_v6 = vpop.f32.mrf.mxu0 }
 0x26d   :  { %v423_v7 = vadd.f32 %v763_v6, %v327_v2  ;;  %v426_v17 = vmax.f32 %v408_v14, 0.0 }
 0x26e   :  { %v417_v9 = vpop.f32.mrf.mxu0 }
 0x26f   :  { %v429_v11 = vmax.f32 %v423_v7, 0.0  ;;  %v418_v12 = vadd.f32 %v417_v9, %v322_v4 }
 0x271   :  { %v428_v15 = vmax.f32 %v418_v12, 0.0  ;;  %764 = vmatprep.subr.mxu1 %v429_v11 }
 0x272   :  { %765 = vmatpush3.msra.mxu1 %v429_v11 }
 0x273   :  { %766 = vmatprep.subr.mxu1 %v428_v15 }
 0x274   :  { %767 = vmatpush3.msra.mxu1 %v428_v15 }
 0x275   :  { %768 = vmatprep.subr.mxu1 %v427_v16 }
 0x276   :  { %769 = vmatpush3.msra.mxu1 %v427_v16 }
 0x277   :  { %770 = vmatprep.subr.mxu1 %v426_v17 }
 0x278   :  { %771 = vmatpush3.msra.mxu1 %v426_v17 }
 0x279   :  { %773 = vmatmul.mubr.msk.f32.vlgmr.msra.gmra.mxu1 %vm199_vm1, %v431_v18 }
 0x27a   :  { %775 = vmatprep.mubr.msk.f32.mxu1 %vm199_vm1, %v432_v19 }
 0x27d   :  { %776 = vmatmul.mubr.msk.f32.gmra.mxu1 %vm199_vm1, %v433_v20 }
 0x339   :  { %v774_v23 = vpop.f32.mrf.mxu1 }
 0x33a   :  { %v542_v30 = vadd.f32 %v774_v23, %v446_v28 }
 0x33b   :  { %v536_v25 = vpop.f32.mrf.mxu1 }
 0x33c   :  { %v537_v34 = vadd.f32 %v536_v25, %v441_v33  ;;  %v556_v36 = vmax.f32 %v542_v30, 0.0 }
 0x33d   :  { %v777_v26 = vpop.f32.mrf.mxu1 }
 0x33e   :  { %v552_v27 = vadd.f32 %v777_v26, %v456_v22  ;;  %v555_v37 = vmax.f32 %v537_v34, 0.0 }
 0x33f   :  { %v546_v29 = vpop.f32.mrf.mxu1 }
 0x340   :  { %v558_v31 = vmax.f32 %v552_v27, 0.0  ;;  %v547_v32 = vadd.f32 %v546_v29, %v451_v24 }
 0x342   :  { %v557_v35 = vmax.f32 %v547_v32, 0.0  ;;  %778 = vmatprep.subr.mxu0 %v558_v31 }
 0x343   :  { %779 = vmatpush3.msra.mxu0 %v558_v31 }
 0x344   :  { %780 = vmatprep.subr.mxu0 %v557_v35 }
 0x345   :  { %781 = vmatpush3.msra.mxu0 %v557_v35 }
 0x346   :  { %782 = vmatprep.subr.mxu0 %v556_v36 }
 0x347   :  { %783 = vmatpush3.msra.mxu0 %v556_v36 }
 0x348   :  { %784 = vmatprep.subr.mxu0 %v555_v37 }
 0x349   :  { %785 = vmatpush3.msra.mxu0 %v555_v37 }
 0x34a   :  { %787 = vmatmul.mubr.msk.f32.vlgmr.msra.gmra.mxu0 %vm199_vm1, %v560_v38 }
 0x40a   :  { %v788_v40 = vpop.f32.mrf.mxu0 }
 0x40b   :  { %v651_v41 = vadd.f32 %v788_v40, %v571_v39 }
 0x40c   :  { %v645_v43 = vpop.f32.mrf.mxu0 }
 0x40d   :  { %655 = vst [vmem:[#allocation2 + $0x8] sm:$0xff] %v651_v41  ;;  %v646_v44 = vadd.f32 %v645_v43, %v566_v42 }
 0x40f   :  { %654 = vst [vmem:[#allocation2] sm:$0xff] %v646_v44 }
 0x410   :  { %806 = shalt.err (!%p803_p4)
}
 0x411   :  { %s819_s9 = smov 128   ;;  %s820_s8 = smov 8  }
 0x412   :  { %667 = dma.vmem_to_hbm [thread:$0]  %s662_s21, 256, %s1027_s11, [#allocation3], %s819_s9, %s819_s9, %s820_s8  }
 0x413   :  { %815 = dma.done.wait [#allocation3], 256  }
 0x414   :  { %816 = vsyncadd [#allocation3], 4294967040 }
 0x415   :  { %671 = vsyncpa [#allocation3], 1 }

</bundles_post_ra>
